<compile_context>
chip_gen: v7x
topology: tpu7x:2x2x1
jax: 0.10.0
libtpu: 0.0.40
codegen_flags: <defaults>
</compile_context>

<pallas_src>
import math

import jax
import jax.numpy as jnp
from jax import lax
from jax.experimental import pallas as pl
from jax.experimental.pallas import tpu as pltpu


def _round_up(x, m):
    return (x + m - 1) // m * m


# ----------------------------------------------------------------------------
# Pallas kernel: L2-normalize -> matmul + bias -> ReLU -> matmul + bias
# ----------------------------------------------------------------------------
def group_mlp_kernel(x_ref, w1_ref, b1_ref, w2_ref, b2_ref, o_ref):
    x = x_ref[...].astype(jnp.float32)                          # (tile_n, C)

    # F.normalize(a, p=2, dim=1, eps=1e-12): x * rsqrt(max(||x||^2, eps^2))
    sq = jnp.sum(x * x, axis=-1, keepdims=True)                 # (tile_n, 1)
    inv = lax.rsqrt(jnp.maximum(sq, 1e-24))                     # EUP rsqrt
    xn = x * inv

    # conv1 (1x1 Conv1d == Linear): h = relu(xn @ W1 + b1)   (MXU)
    h = jnp.dot(xn.astype(w1_ref.dtype), w1_ref[...],
                preferred_element_type=jnp.float32) + b1_ref[...]
    h = jnp.maximum(h, 0.0)

    # conv2 (grouped 1x1 Conv1d == block-diagonal Linear): y = h @ W2 + b2  (MXU)
    y = jnp.dot(h.astype(w2_ref.dtype), w2_ref[...],
                preferred_element_type=jnp.float32) + b2_ref[...]

    o_ref[...] = y.astype(o_ref.dtype)


# ----------------------------------------------------------------------------
# Wrapper: pads features to lane-dense multiples of 128, tiles the batch.
# ----------------------------------------------------------------------------
def group_mlp_forward(x, w1, b1, w2_full, b2, *, tile_n=None,
                      matmul_dtype=jnp.float32, vmem_limit_bytes=None):
    N, C = x.shape
    mid = w1.shape[1]
    out = w2_full.shape[1]

    # --- pad feature dims (zero padding is numerically exact) ---
    mid_p = _round_up(mid, 128)          # 240 -> 256: one MXU K-tile on v6e/v7x
    out_p = _round_up(out, 128)          # 120 -> 128: unmasked lane-dense stores
    w1_p = jnp.pad(w1, ((0, 0), (0, mid_p - mid))).astype(matmul_dtype)
    b1_p = jnp.pad(b1, (0, mid_p - mid)).reshape(1, mid_p).astype(jnp.float32)
    w2_p = jnp.pad(w2_full, ((0, mid_p - mid), (0, out_p - out))).astype(matmul_dtype)
    b2_p = jnp.pad(b2, (0, out_p - out)).reshape(1, out_p).astype(jnp.float32)

    # --- batch tiling: MXU-aligned tile, capped so it fits v7x's 64 MiB VMEM ---
    if tile_n is None:
        tile_n = min(_round_up(N, 8), 1024)
    tile_n = _round_up(tile_n, 8)
    N_p = _round_up(N, tile_n)
    x_p = jnp.pad(x, ((0, N_p - N), (0, 0))) if N_p != N else x
    grid = (N_p // tile_n,)

    w_itemsize = jnp.dtype(matmul_dtype).itemsize
    weight_bytes = w_itemsize * (C * mid_p + mid_p * out_p) + 4 * (mid_p + out_p)
    if vmem_limit_bytes is None:
        # double-buffered x/out tiles + h temp + weights, with 2x headroom
        tile_bytes = 4 * tile_n * (2 * C + 2 * out_p + mid_p)
        vmem_limit_bytes = min(max(2 * (tile_bytes + weight_bytes), 16 << 20), 64 << 20)

    cost = pl.CostEstimate(
        flops=2 * N_p * (C * mid_p + mid_p * out_p),
        transcendentals=N_p,
        bytes_accessed=4 * N_p * (C + out_p) + weight_bytes,
    )

    y_p = pl.pallas_call(
        group_mlp_kernel,
        out_shape=jax.ShapeDtypeStruct((N_p, out_p), x.dtype),
        grid_spec=pltpu.PrefetchScalarGridSpec(
            num_scalar_prefetch=0,
            grid=grid,
            in_specs=[
                pl.BlockSpec((tile_n, C), lambda i: (i, 0)),    # x tile over batch
                pl.BlockSpec((C, mid_p), lambda i: (0, 0)),     # W1 (full, padded)
                pl.BlockSpec((1, mid_p), lambda i: (0, 0)),     # b1
                pl.BlockSpec((mid_p, out_p), lambda i: (0, 0)), # W2 block-diag (padded)
                pl.BlockSpec((1, out_p), lambda i: (0, 0)),     # b2
            ],
            out_specs=pl.BlockSpec((tile_n, out_p), lambda i: (i, 0)),
        ),
        compiler_params=pltpu.CompilerParams(
            dimension_semantics=("parallel",),
            vmem_limit_bytes=int(vmem_limit_bytes),
        ),
        cost_estimate=cost,
    )(x_p, w1_p, b1_p, w2_p, b2_p)

    # slice back to the unpadded logical shape
    return y_p[:N, :out]


# ----------------------------------------------------------------------------
# Deterministic parameter construction (xavier_uniform weights, zero biases)
# ----------------------------------------------------------------------------
def xavier_uniform(key, shape, fan_in, fan_out, dtype=jnp.float32):
    bound = math.sqrt(6.0 / (fan_in + fan_out))
    return jax.random.uniform(key, shape, dtype=dtype, minval=-bound, maxval=bound)


def make_params(key, in_features, mid_features, out_features, groups):
    k1, k2 = jax.random.split(key)

    # conv1: nn.Conv1d(in, mid, 1)  weight shape (mid, in, 1)
    w1_pt = xavier_uniform(k1, (mid_features, in_features), in_features, mid_features)
    w1 = w1_pt.T                                    # (in, mid) for x @ W1
    b1 = jnp.zeros((mid_features,), jnp.float32)

    # conv2: nn.Conv1d(mid, out, 1, groups=60)  weight shape (out, mid//groups, 1)
    mid_g = mid_features // groups
    out_g = out_features // groups
    w2_pt = xavier_uniform(k2, (out_features, mid_g), mid_g, out_features)

    # Block-diagonal (mid, out): output channel o in group g = o // out_g consumes
    # input channels [g*mid_g, (g+1)*mid_g)  -- matches PyTorch grouped conv.
    blocks = [w2_pt[g * out_g:(g + 1) * out_g, :].T for g in range(groups)]
    w2_full = jax.scipy.linalg.block_diag(*blocks)  # (mid, out)
    b2 = jnp.zeros((out_features,), jnp.float32)
    return w1, b1, w2_full, b2


# ----------------------------------------------------------------------------
# Pure-JAX reference
# ----------------------------------------------------------------------------
def reference_forward(x, w1, b1, w2_full, b2):
    xn = x / jnp.maximum(jnp.linalg.norm(x, axis=1, keepdims=True), 1e-12)
    h = jnp.maximum(xn @ w1 + b1, 0.0)
    return h @ w2_full + b2


if __name__ == "__main__":
    # Small shapes consistent with the module:
    #   KG_feature_dim=32 (in), hidden_size=240 (mid), embedding_size=120 (out), groups=60
    N = 8
    IN_FEATURES = 32
    MID_FEATURES = 240
    OUT_FEATURES = 120
    GROUPS = 60

    key = jax.random.PRNGKey(0)
    kx, kp = jax.random.split(key)

    x = jax.random.normal(kx, (N, IN_FEATURES), dtype=jnp.float32)
    w1, b1, w2_full, b2 = make_params(kp, IN_FEATURES, MID_FEATURES, OUT_FEATURES, GROUPS)

    y_ref = reference_forward(x, w1, b1, w2_full, b2)

    # f32 matmuls (default): tight check
    y = group_mlp_forward(x, w1, b1, w2_full, b2)
    y = jax.block_until_ready(y)
    assert y.shape == (N, OUT_FEATURES)
    assert jnp.allclose(y, y_ref, atol=1e-4, rtol=1e-4)

    # bf16 matmul operands (elementwise math stays f32): loose check
    y_bf16 = group_mlp_forward(x, w1, b1, w2_full, b2, matmul_dtype=jnp.bfloat16)
    y_bf16 = jax.block_until_ready(y_bf16)
    assert y_bf16.shape == (N, OUT_FEATURES)
    assert jnp.allclose(y_bf16, y_ref, atol=1e-2, rtol=1e-2)

    print("KERNEL_OK")
</pallas_src>

<mosaic_0001>
module attributes {stable_mosaic.version = 11 : i64} {
  func.func @group_mlp_kernel(%arg0: i32, %arg1: memref<8x32xf32, #tpu.memory_space<vmem>>, %arg2: memref<32x256xf32, #tpu.memory_space<vmem>>, %arg3: memref<1x256xf32, #tpu.memory_space<vmem>>, %arg4: memref<256x128xf32, #tpu.memory_space<vmem>>, %arg5: memref<1x128xf32, #tpu.memory_space<vmem>>, %arg6: memref<8x128xf32, #tpu.memory_space<vmem>>) attributes {dimension_semantics = [#tpu.dimension_semantics<parallel>], iteration_bounds = array<i64: 1>, scalar_prefetch = 0 : i64, scratch_operands = 0 : i64, tpu.core_type = #tpu.core_type<tc>, window_params = [{transform_indices = @transform_0, window_bounds = array<i64: 8, 32>}, {pipeline_mode = #tpu.pipeline_mode<synchronous>, transform_indices = @transform_1, window_bounds = array<i64: 32, 256>}, {pipeline_mode = #tpu.pipeline_mode<synchronous>, transform_indices = @transform_2, window_bounds = array<i64: 1, 256>}, {pipeline_mode = #tpu.pipeline_mode<synchronous>, transform_indices = @transform_3, window_bounds = array<i64: 256, 128>}, {pipeline_mode = #tpu.pipeline_mode<synchronous>, transform_indices = @transform_4, window_bounds = array<i64: 1, 128>}, {transform_indices = @transform_5, window_bounds = array<i64: 8, 128>}]} {
    %c0 = arith.constant 0 : index
    %c0_0 = arith.constant 0 : index
    %0 = vector.load %arg1[%c0, %c0_0] : memref<8x32xf32, #tpu.memory_space<vmem>>, vector<8x32xf32>
    %1 = arith.mulf %0, %0 : vector<8x32xf32>
    %cst = arith.constant dense<0.000000e+00> : vector<8xf32>
    %2 = vector.multi_reduction <add>, %1, %cst [1] : vector<8x32xf32> to vector<8xf32>
    %3 = vector.shape_cast %2 : vector<8xf32> to vector<8x1xf32>
    %cst_1 = arith.constant 1.000000e-24 : f32
    %4 = vector.broadcast %cst_1 : f32 to vector<8x1xf32>
    %5 = arith.maximumf %3, %4 : vector<8x1xf32>
    %6 = math.rsqrt %5 : vector<8x1xf32>
    %7 = vector.broadcast %6 : vector<8x1xf32> to vector<8x32xf32>
    %8 = arith.mulf %0, %7 : vector<8x32xf32>
    %c0_2 = arith.constant 0 : index
    %c0_3 = arith.constant 0 : index
    %9 = vector.load %arg2[%c0_2, %c0_3] : memref<32x256xf32, #tpu.memory_space<vmem>>, vector<32x256xf32>
    %cst_4 = arith.constant dense<0.000000e+00> : vector<8x256xf32>
    %10 = tpu.matmul %8, %9, %cst_4 {dimension_numbers = #tpu.dot_dimension_numbers<[1], [0], [0], [1], [0, 0, 1, 1], [], []>} : vector<8x32xf32>, vector<32x256xf32>, vector<8x256xf32> -> vector<8x256xf32>
    %c0_5 = arith.constant 0 : index
    %c0_6 = arith.constant 0 : index
    %11 = vector.load %arg3[%c0_5, %c0_6] : memref<1x256xf32, #tpu.memory_space<vmem>>, vector<1x256xf32>
    %12 = vector.broadcast %11 : vector<1x256xf32> to vector<8x256xf32>
    %13 = arith.addf %10, %12 : vector<8x256xf32>
    %cst_7 = arith.constant 0.000000e+00 : f32
    %14 = vector.broadcast %cst_7 : f32 to vector<8x256xf32>
    %15 = arith.maximumf %13, %14 : vector<8x256xf32>
    %c0_8 = arith.constant 0 : index
    %c0_9 = arith.constant 0 : index
    %16 = vector.load %arg4[%c0_8, %c0_9] : memref<256x128xf32, #tpu.memory_space<vmem>>, vector<256x128xf32>
    %cst_10 = arith.constant dense<0.000000e+00> : vector<8x128xf32>
    %17 = tpu.matmul %15, %16, %cst_10 {dimension_numbers = #tpu.dot_dimension_numbers<[1], [0], [0], [1], [0, 0, 1, 1], [], []>} : vector<8x256xf32>, vector<256x128xf32>, vector<8x128xf32> -> vector<8x128xf32>
    %c0_11 = arith.constant 0 : index
    %c0_12 = arith.constant 0 : index
    %18 = vector.load %arg5[%c0_11, %c0_12] : memref<1x128xf32, #tpu.memory_space<vmem>>, vector<1x128xf32>
    %19 = vector.broadcast %18 : vector<1x128xf32> to vector<8x128xf32>
    %20 = arith.addf %17, %19 : vector<8x128xf32>
    %c0_13 = arith.constant 0 : index
    %c0_14 = arith.constant 0 : index
    %21 = vector.load %arg6[%c0_13, %c0_14] : memref<8x128xf32, #tpu.memory_space<vmem>>, vector<8x128xf32>
    tpu.vector_store %arg6[%c0_13, %c0_14], %20 {strides = array<i32>} : memref<8x128xf32, #tpu.memory_space<vmem>>, vector<8x128xf32>,
    return
  }
  func.func @transform_0(%arg0: i32) -> (i32, i32) {
    %c0_i32 = arith.constant 0 : i32
    %c0_i32_0 = arith.constant 0 : i32
    return %arg0, %c0_i32 : i32, i32
  }
  func.func @transform_1(%arg0: i32) -> (i32, i32) {
    %c0_i32 = arith.constant 0 : i32
    %c0_i32_0 = arith.constant 0 : i32
    %c0_i32_1 = arith.constant 0 : i32
    return %c0_i32, %c0_i32_0 : i32, i32
  }
  func.func @transform_2(%arg0: i32) -> (i32, i32) {
    %c0_i32 = arith.constant 0 : i32
    %c0_i32_0 = arith.constant 0 : i32
    %c0_i32_1 = arith.constant 0 : i32
    return %c0_i32, %c0_i32_0 : i32, i32
  }
  func.func @transform_3(%arg0: i32) -> (i32, i32) {
    %c0_i32 = arith.constant 0 : i32
    %c0_i32_0 = arith.constant 0 : i32
    %c0_i32_1 = arith.constant 0 : i32
    return %c0_i32, %c0_i32_0 : i32, i32
  }
  func.func @transform_4(%arg0: i32) -> (i32, i32) {
    %c0_i32 = arith.constant 0 : i32
    %c0_i32_0 = arith.constant 0 : i32
    %c0_i32_1 = arith.constant 0 : i32
    return %c0_i32, %c0_i32_0 : i32, i32
  }
  func.func @transform_5(%arg0: i32) -> (i32, i32) {
    %c0_i32 = arith.constant 0 : i32
    %c0_i32_0 = arith.constant 0 : i32
    return %arg0, %c0_i32 : i32, i32
  }
}

</mosaic_0001>

<bundles_post_ra>
// kernel: tpu_custom_call.1
= control target key start
LH: loop header
LB: loop body
LE: loop exit
PB: predicated region body
PF: predicated region fallthrough
CT: control target
= control target key end

     0   :  { %10 = vsyncpa [#allocation3], 0  ;;  %s573_s0 = inlined_call_operand.hbm [shape: f32[8,32], index: 0, kind: input, shape index: {}]   ;;  %s574_s1 = inlined_call_operand.hbm [shape: f32[32,256], index: 1, kind: input, shape index: {}]   ;;  %s575_s2 = inlined_call_operand.vmem [shape: f32[1,256], index: 2, kind: input, shape index: {}]   ;;  %s576_s3 = inlined_call_operand.hbm [shape: f32[256,128], index: 3, kind: input, shape index: {}]   ;;  %s577_s4 = inlined_call_operand.vmem [shape: f32[1,128], index: 4, kind: input, shape index: {}]   ;;  %s578_s5 = inlined_call_operand.hbm [shape: f32[8,128], index: 5, kind: output, shape index: {}]  }
   0x1   :  { %11 = vsyncpa [#allocation6], 0 }
   0x2   :  { %12 = vsyncpa [#allocation4], 0  ;;  %s473_s18 = smov [#allocation5]   ;;  %s379_s22 = scalar_lea.hbm %s574_s1, 1024 }
   0x3   :  { %s28_s19 = sshll.u32 %s473_s18, 4  ;;  %p380_p0 = scmp.ne.s32.totalorder %s574_s1, %s379_s22  ;;  %s29_s19 = int_to_ptr.vmem [resolvable:$true] %s28_s19 }
   0x4   :  { %p383_p1 = scmp.lt.u32.totalorder %s379_s22, %s574_s1 }
   0x6   :  { %p385_p2 = pnand %p383_p1, %p380_p0 }
   0x8   :  { %388 = shalt.err (!%p385_p2)
}
   0x9   :  { %s389_s27 = scalar_lea.vmem %s29_s19, 1024  ;;  %p394_p4 = scmp.lt.s32.totalorder %s29_s19, %s29_s19 }
   0xa   :  { %p390_p3 = scmp.ne.s32.totalorder %s29_s19, %s389_s27  ;;  %p395_p5 = scmp.lt.s32.totalorder %s389_s27, %s389_s27 }
   0xc   :  { %p396_p6 = por %p395_p5, %p394_p4 }
   0xe   :  { %p397_p7 = pnand %p396_p6, %p390_p3 }
  0x10   :  { %400 = shalt.err (!%p397_p7)
}
  0x11   :  { %s474_s28 = smov 256   ;;  %s475_s29 = smov 16  }
  0x12   :  { %34 = dma.hbm_to_vmem [thread:$0]  %s574_s1, 1024, %s29_s19, [#allocation6], %s474_s28, %s474_s28, %s475_s29  }
  0x13   :  { %s476_s7 = smov [#allocation2]   ;;  %s477_s9 = smov [#allocation7]  }
  0x14   :  { %s19_s8 = sshll.u32 %s476_s7, 4  ;;  %s42_s10 = sshll.u32 %s477_s9, 4  ;;  %s20_s8 = int_to_ptr.vmem [resolvable:$true] %s19_s8  ;;  %s43_s10 = int_to_ptr.vmem [resolvable:$true] %s42_s10 }
  0x15   :  { %s401_s13 = scalar_lea.hbm %s573_s0, 128 }
  0x16   :  { %p402_p8 = scmp.ne.s32.totalorder %s573_s0, %s401_s13  ;;  %p405_p9 = scmp.lt.u32.totalorder %s401_s13, %s573_s0 }
  0x18   :  { %p407_p10 = pnand %p405_p9, %p402_p8 }
  0x1a   :  { %410 = shalt.err (!%p407_p10)
}
  0x1b   :  { %s411_s1 = scalar_lea.vmem %s20_s8, 128  ;;  %p416_p12 = scmp.lt.s32.totalorder %s20_s8, %s20_s8 }
  0x1c   :  { %p412_p11 = scmp.ne.s32.totalorder %s20_s8, %s411_s1  ;;  %p417_p13 = scmp.lt.s32.totalorder %s411_s1, %s411_s1 }
  0x1e   :  { %p418_p0 = por %p417_p13, %p416_p12 }
  0x20   :  { %p419_p1 = pnand %p418_p0, %p412_p11 }
  0x22   :  { %422 = shalt.err (!%p419_p1)
}
  0x23   :  { %22 = dma.hbm_to_vmem [thread:$0]  %s573_s0, 128, %s20_s8, [#allocation3]  }
  0x24   :  { %s423_s22 = scalar_lea.hbm %s576_s3, 4096 }
  0x25   :  { %p424_p2 = scmp.ne.s32.totalorder %s576_s3, %s423_s22  ;;  %p427_p3 = scmp.lt.u32.totalorder %s423_s22, %s576_s3 }
  0x27   :  { %p429_p4 = pnand %p427_p3, %p424_p2 }
  0x29   :  { %432 = shalt.err (!%p429_p4)
}
  0x2a   :  { %s433_s27 = scalar_lea.vmem %s43_s10, 4096  ;;  %p438_p6 = scmp.lt.s32.totalorder %s43_s10, %s43_s10 }
  0x2b   :  { %p434_p5 = scmp.ne.s32.totalorder %s43_s10, %s433_s27  ;;  %p439_p7 = scmp.lt.s32.totalorder %s433_s27, %s433_s27 }
  0x2d   :  { %p440_p8 = por %p439_p7, %p438_p6 }
  0x2f   :  { %p441_p9 = pnand %p440_p8, %p434_p5 }
  0x31   :  { %444 = shalt.err (!%p441_p9)
}
  0x32   :  { %s478_s0 = smov 128   ;;  %s479_s28 = smov 8  }
  0x33   :  { %48 = dma.hbm_to_vmem [thread:$0]  %s576_s3, 4096, %s43_s10, [#allocation6], %s478_s0, %s478_s0, %s479_s28  }
  0x34   :  { %467 = dma.done.wait [#allocation3], 128  }
  0x35   :  { %468 = vsyncadd [#allocation3], 4294967168 }
  0x36   :  { %469 = dma.done.wait [#allocation6], 5120  }
  0x37   :  { %470 = vsyncadd [#allocation6], 4294962176  ;;  %v548_v0 = vld [vmem:[#allocation2] sm:$0xff]  ;;  %vm62_vm0 = vcmask 261120   ;;  %v70_v3 = vld [vmem:[#allocation5 + $0x8] sm:$0xff]  ;;  %v480_v10 = vmov 0.0  }
  0x38   :  { %v61_v1 = vmul.f32 %v548_v0, %v548_v0  ;;  %v72_v4 = vld [vmem:[#allocation5 + $0x18] sm:$0xff]  ;;  %v69_v5 = vld [vmem:[#allocation5] sm:$0xff]  ;;  %v71_v7 = vld [vmem:[#allocation5 + $0x10] sm:$0xff]  ;;  %156 = vmatprep.mubr.f32.mxu0 %v480_v10  ;;  %s481_s9 = smov [#allocation8]  }
  0x39   :  { %v328_v6 = vpack.c.bf16 %v72_v4, %v70_v3  ;;  %v74_v8 = vld [vmem:[#allocation5 + $0x28] sm:$0xff]  ;;  %v76_v9 = vld [vmem:[#allocation5 + $0x38] sm:$0xff]  ;;  %v330_v11 = vpack.c.bf16 %v71_v7, %v69_v5  ;;  %v73_v13 = vld [vmem:[#allocation5 + $0x20] sm:$0xff]  ;;  %v79_v5 = vlaneseq  ;;  %s281_s10 = sshll.u32 %s481_s9, 4  ;;  %s282_s10 = int_to_ptr.vmem [resolvable:$true] %s281_s10 }
  0x3a   :  { %v63_v2 = vsel %vm62_vm0, %v61_v1, 0.0  ;;  %v332_v12 = vpack.c.bf16 %v76_v9, %v74_v8  ;;  %v75_v14 = vld [vmem:[#allocation5 + $0x30] sm:$0xff]  ;;  %v181_v16 = vld [vmem:[#allocation7 + $0x80] sm:$0xff]  ;;  %v182_v17 = vld [vmem:[#allocation7 + $0x88] sm:$0xff]  ;;  %p450_p11 = scmp.lt.s32.totalorder %s282_s10, %s282_s10 }
  0x3b   :  { %64 = vadd.xlane.f32.xlu0 %v63_v2  ;;  %329 = vmatprep.subr.bf16.mxu0 %v328_v6  ;;  %v334_v15 = vpack.c.bf16 %v75_v14, %v73_v13  ;;  %v165_v18 = vld [vmem:[#allocation7] sm:$0xff]  ;;  %v336_v19 = vpack.c.bf16 %v182_v17, %v181_v16  ;;  %v166_v20 = vld [vmem:[#allocation7 + $0x8] sm:$0xff]  ;;  %v183_v21 = vld [vmem:[#allocation7 + $0x90] sm:$0xff]  ;;  %v80_v6 = vshrl.u32 %v79_v5, 7 }
  0x3c   :  { %331 = vmatpush1.bf16.msra.mxu0 %v330_v11  ;;  %v184_v22 = vld [vmem:[#allocation7 + $0x98] sm:$0xff]  ;;  %v338_v23 = vpack.c.bf16 %v166_v20, %v165_v18  ;;  %v167_v25 = vld [vmem:[#allocation7 + $0x10] sm:$0xff]  ;;  %v185_v27 = vld [vmem:[#allocation7 + $0xa0] sm:$0xff] }
  0x3d   :  { %333 = vmatprep.subr.bf16.mxu0 %v332_v12  ;;  %v340_v24 = vpack.c.bf16 %v184_v22, %v183_v21  ;;  %v168_v26 = vld [vmem:[#allocation7 + $0x18] sm:$0xff]  ;;  %337 = vmatprep.subr.bf16.mxu1 %v336_v19  ;;  %v186_v28 = vld [vmem:[#allocation7 + $0xa8] sm:$0xff]  ;;  %v169_v31 = vld [vmem:[#allocation7 + $0x20] sm:$0xff]  ;;  %v81_v7 = vsub.s32 0, %v80_v6  ;;  %v85_v8 = vsub.s32 1, %v80_v6 }
  0x3e   :  { %339 = vmatpush3.bf16.msra.mxu1 %v338_v23  ;;  %v342_v29 = vpack.c.bf16 %v168_v26, %v167_v25  ;;  %v344_v30 = vpack.c.bf16 %v186_v28, %v185_v27  ;;  %v170_v32 = vld [vmem:[#allocation7 + $0x28] sm:$0xff]  ;;  %v187_v33 = vld [vmem:[#allocation7 + $0xb0] sm:$0xff]  ;;  %v188_v34 = vld [vmem:[#allocation7 + $0xb8] sm:$0xff] }
  0x3f   :  { %341 = vmatprep.subr.bf16.mxu1 %v340_v24  ;;  %v346_v35 = vpack.c.bf16 %v170_v32, %v169_v31  ;;  %v348_v36 = vpack.c.bf16 %v188_v34, %v187_v33  ;;  %v171_v37 = vld [vmem:[#allocation7 + $0x30] sm:$0xff]  ;;  %v172_v38 = vld [vmem:[#allocation7 + $0x38] sm:$0xff]  ;;  %v189_v39 = vld [vmem:[#allocation7 + $0xc0] sm:$0xff] }
  0x40   :  { %335 = vmatpush1.bf16.msra.mxu0 %v334_v15  ;;  %v190_v40 = vld [vmem:[#allocation7 + $0xc8] sm:$0xff]  ;;  %v350_v41 = vpack.c.bf16 %v172_v38, %v171_v37  ;;  %v173_v43 = vld [vmem:[#allocation7 + $0x40] sm:$0xff]  ;;  %v191_v45 = vld [vmem:[#allocation7 + $0xd0] sm:$0xff] }
  0x41   :  { %v352_v42 = vpack.c.bf16 %v190_v40, %v189_v39  ;;  %v174_v44 = vld [vmem:[#allocation7 + $0x48] sm:$0xff]  ;;  %v192_v46 = vld [vmem:[#allocation7 + $0xd8] sm:$0xff]  ;;  %v175_v49 = vld [vmem:[#allocation7 + $0x50] sm:$0xff] }
  0x42   :  { %343 = vmatpush3.bf16.msra.mxu1 %v342_v29  ;;  %v354_v47 = vpack.c.bf16 %v174_v44, %v173_v43  ;;  %v356_v48 = vpack.c.bf16 %v192_v46, %v191_v45  ;;  %v176_v50 = vld [vmem:[#allocation7 + $0x58] sm:$0xff]  ;;  %v193_v51 = vld [vmem:[#allocation7 + $0xe0] sm:$0xff]  ;;  %v194_v52 = vld [vmem:[#allocation7 + $0xe8] sm:$0xff] }
  0x43   :  { %345 = vmatprep.subr.bf16.mxu1 %v344_v30  ;;  %v358_v53 = vpack.c.bf16 %v176_v50, %v175_v49  ;;  %v360_v54 = vpack.c.bf16 %v194_v52, %v193_v51  ;;  %v177_v59 = vld [vmem:[#allocation7 + $0x60] sm:$0xff]  ;;  %v178_v60 = vld [vmem:[#allocation7 + $0x68] sm:$0xff]  ;;  %v195_v62 = vld [vmem:[#allocation7 + $0xf0] sm:$0xff] }
  0x44   :  { %v362_v61 = vpack.c.bf16 %v178_v60, %v177_v59  ;;  %v196_v63 = vld [vmem:[#allocation7 + $0xf8] sm:$0xff]  ;;  %v179_v2 = vld [vmem:[#allocation7 + $0x70] sm:$0xff] }
  0x45   :  { %v364_v1 = vpack.c.bf16 %v196_v63, %v195_v62  ;;  %v180_v3 = vld [vmem:[#allocation7 + $0x78] sm:$0xff] }
  0x46   :  { %347 = vmatpush3.bf16.msra.mxu1 %v346_v35  ;;  %v366_v4 = vpack.c.bf16 %v180_v3, %v179_v2  ;;  %v292_v18 = vld [vmem:[%s577_s4] ss:$0 sm:$0xff] }
  0x47   :  { %349 = vmatprep.subr.bf16.mxu1 %v348_v36 }
  0x4a   :  { %351 = vmatpush3.bf16.msra.mxu1 %v350_v41 }
  0x4b   :  { %353 = vmatprep.subr.bf16.mxu1 %v352_v42 }
  0x4e   :  { %355 = vmatpush3.bf16.msra.mxu1 %v354_v47 }
  0x4f   :  { %357 = vmatprep.subr.bf16.mxu1 %v356_v48 }
  0x52   :  { %359 = vmatpush3.bf16.msra.mxu1 %v358_v53 }
  0x53   :  { %361 = vmatprep.subr.bf16.mxu1 %v360_v54 }
  0x56   :  { %363 = vmatpush3.bf16.msra.mxu1 %v362_v61 }
  0x57   :  { %365 = vmatprep.subr.bf16.mxu1 %v364_v1 }
  0x5a   :  { %367 = vmatpush3.bf16.msra.mxu1 %v366_v4 }
  0xc8   :  { %v65_v55 = vpop.xlane.xlu0 %64 }
  0xc9   :  { %v66_v56 = vmax.f32 %v65_v55, 1e-24 }
  0xcb   :  { %377 = vrsqrt.f32 %v66_v56 }
  0xd5   :  { %v378_v57 = vpop.eup %377 }
  0xd6   :  { %v68_v58 = vmul.f32 %v378_v57, %v548_v0  ;;  %v77_v0 = vld [vmem:[%s575_s2] sm:$0x3]  ;;  %s445_s2 = scalar_lea.vmem %s282_s10, 128 }
  0xd7   :  { %v82_v9 = vrot.slane %v77_v0, %v81_v7  ;;  %v86_v10 = vrot.slane %v77_v0, %v85_v8  ;;  %p446_p10 = scmp.ne.s32.totalorder %s282_s10, %s445_s2  ;;  %p451_p12 = scmp.lt.s32.totalorder %s445_s2, %s445_s2 }
  0xd8   :  { %291 = vmatmul.mubr.msk.f32.vlgmr.msra.gmra.mrb[0].mxu0 %vm62_vm0, %v68_v58 }
  0xd9   :  { %p452_p13 = por %p451_p12, %p450_p11 }
  0xdb   :  { %p453_p0 = pnand %p452_p13, %p446_p10 }
 0x1ab   :  { %v158_v11 = vpop.f32.mrb[0].mxu0 }
 0x1ac   :  { %v159_v12 = vadd.f32 %v158_v11, %v82_v9  ;;  %v160_v13 = vpop.f32.mrb[1].mxu0 }
 0x1ad   :  { %v161_v14 = vadd.f32 %v160_v13, %v86_v10 }
 0x1ae   :  { %v163_v16 = vmax.f32 %v159_v12, 0.0 }
 0x1af   :  { %v164_v15 = vmax.f32 %v161_v14, 0.0 }
 0x1b1   :  { %268 = vmatprep.mubr.f32.mxu1 %v164_v15 }
 0x1b2   :  { %269 = vmatmul.mubr.f32.vlgmr.msra.gmra.mrb[0].mxu1 %v163_v16 }
 0x285   :  { %v325_v17 = vpop.f32.mrb[0].mxu1 }
 0x286   :  { %v326_v19 = vpop.f32.mrb[1].mxu1 }
 0x287   :  { %v327_v20 = vadd.f32 %v326_v19, %v325_v17 }
 0x289   :  { %v271_v21 = vadd.f32 %v327_v20, %v292_v18 }
 0x28b   :  { %274 = vst [vmem:[#allocation8] sm:$0xff] %v271_v21 }
 0x28c   :  { %456 = shalt.err (!%p453_p0)
}
 0x28d   :  { %s457_s13 = scalar_lea.hbm %s578_s5, 128 }
 0x28e   :  { %p458_p1 = scmp.ne.s32.totalorder %s578_s5, %s457_s13  ;;  %p461_p2 = scmp.lt.u32.totalorder %s457_s13, %s578_s5 }
 0x290   :  { %p463_p3 = pnand %p461_p2, %p458_p1 }
 0x292   :  { %466 = shalt.err (!%p463_p3)
}
 0x293   :  { %284 = dma.vmem_to_hbm [thread:$0]  %s282_s10, 128, %s578_s5, [#allocation4]  }
 0x294   :  { %471 = dma.done.wait [#allocation4], 128  }
 0x295   :  { %472 = vsyncadd [#allocation4], 4294967168 }
 0x296   :  { %288 = vsyncpa [#allocation3], 1 }
 0x297   :  { %289 = vsyncpa [#allocation6], 1 }
 0x298   :  { %290 = vsyncpa [#allocation4], 1 }

</bundles_post_ra>
